<compile_context>
chip_gen: v7x
topology: tpu7x:2x2x1
jax: 0.10.0
libtpu: 0.0.40
codegen_flags: <defaults>
</compile_context>

<pallas_src>
import jax
import jax.numpy as jnp
from jax.experimental import pallas as pl
from jax.experimental.pallas import tpu as pltpu

_EPS = 1e-5  # nn.LayerNorm default


def _cnn_ln_kernel(x_ref, gamma_ref, beta_ref, o_ref):
    """LayerNorm over the feats (sublane) axis of a (bm, F, tile_t) tile.

    x_ref:     (bm, F, tile_t) input tile   (lanes = T, sublanes = F)
    gamma_ref: (1,  F, 1)      scale, broadcast over rows and lanes
    beta_ref:  (1,  F, 1)      shift
    o_ref:     (bm, F, tile_t) output tile
    """
    x = x_ref[...].astype(jnp.float32)
    inv_f = 1.0 / x.shape[1]
    # Fused single pass: sum(x) and sum(x*x) over the feats axis.
    s1 = jnp.sum(x, axis=1, keepdims=True)
    s2 = jnp.sum(x * x, axis=1, keepdims=True)
    mean = s1 * inv_f
    # PyTorch LayerNorm uses the biased variance (divide by F).
    var = s2 * inv_f - mean * mean
    inv = jax.lax.rsqrt(var + _EPS)
    g = gamma_ref[...].astype(jnp.float32)
    b = beta_ref[...].astype(jnp.float32)
    o_ref[...] = ((x - mean) * inv * g + b).astype(o_ref.dtype)


def _pick_tile_t(t, max_lanes=2048):
    """Largest multiple of 128 that divides T (capped), else the full T dim."""
    if t % 128 == 0:
        for cand in (max_lanes, 1024, 512, 256, 128):
            if cand <= max_lanes and t % cand == 0:
                return cand
    # TODO(synk): T not a multiple of 128 falls back to a full-T block; a
    # ragged-lane masked-store path would avoid very large blocks for huge T.
    return t


def _pick_bm(nc, feats, tile_t, itemsize, target_bytes=1 << 20):
    """Fold N*C rows into one block up to ~target_bytes per input block."""
    per_row = feats * tile_t * itemsize
    cap = max(1, target_bytes // per_row)
    bm = 1
    for cand in range(min(nc, cap), 0, -1):
        if nc % cand == 0:
            bm = cand
            break
    return bm


@jax.jit
def cnn_layer_norm(x, gamma, beta):
    """Equivalent of CNNLayerNorm.forward for x of shape (N, C, n_feats, T)."""
    n, c, feats, t = x.shape
    nc = n * c
    # Contiguous reshape only -- no transpose, no extra HBM pass.
    x3d = x.reshape(nc, feats, t)

    tile_t = _pick_tile_t(t)
    bm = _pick_bm(nc, feats, tile_t, jnp.dtype(x.dtype).itemsize)
    # Prefer >=2 grid steps so the v7x megacore / pipeline has work to split.
    if (nc // bm) * (t // tile_t) < 2 and bm > 1:
        for cand in range(bm // 2, 0, -1):
            if nc % cand == 0:
                bm = cand
                break

    gamma3d = gamma.reshape(1, feats, 1)
    beta3d = beta.reshape(1, feats, 1)

    out = pl.pallas_call(
        _cnn_ln_kernel,
        out_shape=jax.ShapeDtypeStruct((nc, feats, t), x.dtype),
        grid_spec=pltpu.PrefetchScalarGridSpec(
            num_scalar_prefetch=0,
            grid=(nc // bm, t // tile_t),
            in_specs=[
                pl.BlockSpec((bm, feats, tile_t), lambda i, j: (i, 0, j)),
                pl.BlockSpec((1, feats, 1), lambda i, j: (0, 0, 0)),
                pl.BlockSpec((1, feats, 1), lambda i, j: (0, 0, 0)),
            ],
            out_specs=pl.BlockSpec((bm, feats, tile_t), lambda i, j: (i, 0, j)),
        ),
        compiler_params=pltpu.CompilerParams(
            dimension_semantics=("parallel", "parallel"),
        ),
    )(x3d, gamma3d, beta3d)

    return out.reshape(n, c, feats, t)


def _reference(x, gamma, beta):
    """Pure-JAX reference mirroring the PyTorch module (transpose-based)."""
    xt = jnp.transpose(x, (0, 1, 3, 2)).astype(jnp.float32)
    mean = jnp.mean(xt, axis=-1, keepdims=True)
    var = jnp.mean((xt - mean) ** 2, axis=-1, keepdims=True)
    y = (xt - mean) / jnp.sqrt(var + _EPS) * gamma + beta
    return jnp.transpose(y, (0, 1, 3, 2)).astype(x.dtype)


if __name__ == "__main__":
    key = jax.random.PRNGKey(0)
    k_x, k_g, k_b = jax.random.split(key, 3)

    N, C, F, T = 2, 4, 16, 16  # (batch, channels, n_feats, time)
    x = jax.random.normal(k_x, (N, C, F, T), dtype=jnp.float32)
    # nn.LayerNorm(n_feats) weight/bias have shape (n_feats,); perturbed from
    # the default 1/0 init so the affine path is exercised.
    gamma = 1.0 + 0.1 * jax.random.normal(k_g, (F,), dtype=jnp.float32)
    beta = 0.1 * jax.random.normal(k_b, (F,), dtype=jnp.float32)

    y = cnn_layer_norm(x, gamma, beta)
    jax.block_until_ready(y)

    y_ref = _reference(x, gamma, beta)
    assert y.shape == x.shape
    assert jnp.allclose(y, y_ref, atol=1e-5, rtol=1e-5), "mismatch vs reference"

    print("KERNEL_OK")
</pallas_src>

<mosaic_0001>
module attributes {stable_mosaic.version = 11 : i64} {
  func.func @_cnn_ln_kernel(%arg0: i32, %arg1: i32, %arg2: memref<4x16x16xf32, #tpu.memory_space<vmem>>, %arg3: memref<1x16x1xf32, #tpu.memory_space<vmem>>, %arg4: memref<1x16x1xf32, #tpu.memory_space<vmem>>, %arg5: memref<4x16x16xf32, #tpu.memory_space<vmem>>) attributes {dimension_semantics = [#tpu.dimension_semantics<parallel>, #tpu.dimension_semantics<parallel>], iteration_bounds = array<i64: 2, 1>, scalar_prefetch = 0 : i64, scratch_operands = 0 : i64, tpu.core_type = #tpu.core_type<tc>, window_params = [{transform_indices = @transform_0, window_bounds = array<i64: 4, 16, 16>}, {pipeline_mode = #tpu.pipeline_mode<synchronous>, transform_indices = @transform_1, window_bounds = array<i64: 1, 16, 1>}, {pipeline_mode = #tpu.pipeline_mode<synchronous>, transform_indices = @transform_2, window_bounds = array<i64: 1, 16, 1>}, {transform_indices = @transform_3, window_bounds = array<i64: 4, 16, 16>}]} {
    %c0 = arith.constant 0 : index
    %c0_0 = arith.constant 0 : index
    %c0_1 = arith.constant 0 : index
    %0 = vector.load %arg2[%c0, %c0_0, %c0_1] : memref<4x16x16xf32, #tpu.memory_space<vmem>>, vector<4x16x16xf32>
    %cst = arith.constant dense<0.000000e+00> : vector<4x16xf32>
    %1 = vector.multi_reduction <add>, %0, %cst [1] : vector<4x16x16xf32> to vector<4x16xf32>
    %2 = vector.shape_cast %1 : vector<4x16xf32> to vector<4x1x16xf32>
    %3 = arith.mulf %0, %0 : vector<4x16x16xf32>
    %cst_2 = arith.constant dense<0.000000e+00> : vector<4x16xf32>
    %4 = vector.multi_reduction <add>, %3, %cst_2 [1] : vector<4x16x16xf32> to vector<4x16xf32>
    %5 = vector.shape_cast %4 : vector<4x16xf32> to vector<4x1x16xf32>
    %cst_3 = arith.constant 6.250000e-02 : f32
    %6 = vector.broadcast %cst_3 : f32 to vector<4x1x16xf32>
    %7 = arith.mulf %2, %6 : vector<4x1x16xf32>
    %cst_4 = arith.constant 6.250000e-02 : f32
    %8 = vector.broadcast %cst_4 : f32 to vector<4x1x16xf32>
    %9 = arith.mulf %5, %8 : vector<4x1x16xf32>
    %10 = arith.mulf %7, %7 : vector<4x1x16xf32>
    %11 = arith.subf %9, %10 : vector<4x1x16xf32>
    %cst_5 = arith.constant 9.99999974E-6 : f32
    %12 = vector.broadcast %cst_5 : f32 to vector<4x1x16xf32>
    %13 = arith.addf %11, %12 : vector<4x1x16xf32>
    %14 = math.rsqrt %13 : vector<4x1x16xf32>
    %c0_6 = arith.constant 0 : index
    %c0_7 = arith.constant 0 : index
    %c0_8 = arith.constant 0 : index
    %15 = vector.load %arg3[%c0_6, %c0_7, %c0_8] : memref<1x16x1xf32, #tpu.memory_space<vmem>>, vector<1x16x1xf32>
    %c0_9 = arith.constant 0 : index
    %c0_10 = arith.constant 0 : index
    %c0_11 = arith.constant 0 : index
    %16 = vector.load %arg4[%c0_9, %c0_10, %c0_11] : memref<1x16x1xf32, #tpu.memory_space<vmem>>, vector<1x16x1xf32>
    %17 = vector.broadcast %7 : vector<4x1x16xf32> to vector<4x16x16xf32>
    %18 = arith.subf %0, %17 : vector<4x16x16xf32>
    %19 = vector.broadcast %14 : vector<4x1x16xf32> to vector<4x16x16xf32>
    %20 = arith.mulf %18, %19 : vector<4x16x16xf32>
    %21 = vector.broadcast %15 : vector<1x16x1xf32> to vector<4x16x16xf32>
    %22 = arith.mulf %20, %21 : vector<4x16x16xf32>
    %23 = vector.broadcast %16 : vector<1x16x1xf32> to vector<4x16x16xf32>
    %24 = arith.addf %22, %23 : vector<4x16x16xf32>
    %c0_12 = arith.constant 0 : index
    %c0_13 = arith.constant 0 : index
    %c0_14 = arith.constant 0 : index
    %25 = vector.load %arg5[%c0_12, %c0_13, %c0_14] : memref<4x16x16xf32, #tpu.memory_space<vmem>>, vector<4x16x16xf32>
    tpu.vector_store %arg5[%c0_12, %c0_13, %c0_14], %24 {strides = array<i32>} : memref<4x16x16xf32, #tpu.memory_space<vmem>>, vector<4x16x16xf32>,
    return
  }
  func.func @transform_0(%arg0: i32, %arg1: i32) -> (i32, i32, i32) {
    %c0_i32 = arith.constant 0 : i32
    %c0_i32_0 = arith.constant 0 : i32
    return %arg0, %c0_i32, %arg1 : i32, i32, i32
  }
  func.func @transform_1(%arg0: i32, %arg1: i32) -> (i32, i32, i32) {
    %c0_i32 = arith.constant 0 : i32
    %c0_i32_0 = arith.constant 0 : i32
    %c0_i32_1 = arith.constant 0 : i32
    %c0_i32_2 = arith.constant 0 : i32
    return %c0_i32, %c0_i32_0, %c0_i32_1 : i32, i32, i32
  }
  func.func @transform_2(%arg0: i32, %arg1: i32) -> (i32, i32, i32) {
    %c0_i32 = arith.constant 0 : i32
    %c0_i32_0 = arith.constant 0 : i32
    %c0_i32_1 = arith.constant 0 : i32
    %c0_i32_2 = arith.constant 0 : i32
    return %c0_i32, %c0_i32_0, %c0_i32_1 : i32, i32, i32
  }
  func.func @transform_3(%arg0: i32, %arg1: i32) -> (i32, i32, i32) {
    %c0_i32 = arith.constant 0 : i32
    %c0_i32_0 = arith.constant 0 : i32
    return %arg0, %c0_i32, %arg1 : i32, i32, i32
  }
}

</mosaic_0001>

<bundles_post_ra>
// kernel: cnn_layer_norm.1
= control target key start
LH: loop header
LB: loop body
LE: loop exit
PB: predicated region body
PF: predicated region fallthrough
CT: control target
= control target key end

     0   :  { %8 = vsyncpa [#allocation3], 0  ;;  %s989_s0 = inlined_call_operand.hbm [shape: f32[8,16,16], index: 0, kind: input, shape index: {}]   ;;  %s990_s1 = inlined_call_operand.vmem [shape: f32[1,16,1], index: 1, kind: input, shape index: {}]   ;;  %s991_s2 = inlined_call_operand.vmem [shape: f32[1,16,1], index: 2, kind: input, shape index: {}]   ;;  %s992_s3 = inlined_call_operand.hbm [shape: f32[8,16,16], index: 3, kind: output, shape index: {}]  }
   0x1   :  { %10 = vsyncpa [#allocation3 + $0x1], 0 }
   0x2   :  { %11 = vsyncpa [#allocation4], 0 }
   0x3   :  { %13 = vsyncpa [#allocation4 + $0x1], 0  ;;  %s726_s12 = smov 0   ;;  %s728_s13 = smov 0  }
   0x4   :  { %s730_s14 = smov 0   ;;  %s732_s15 = smov 0  }
   0x5   :  { %s734_s16 = smov 0   ;;  %s736_s17 = smov 0  }
   0x6 LB: > { %s487_s18 = sadd.s32 4294967295, %s697_s17   ;;  %s488_s19 = sadd.s32 4294967294, %s697_s17   ;;  %s697_s17 = sphi %s736_s17, %s19_s17   ;;  %s693_s16 = sphi %s734_s16, %s1007_s16   ;;  %s689_s15 = sphi %s732_s15, %s1006_s15   ;;  %s685_s14 = sphi %s730_s14, %s1005_s14   ;;  %s681_s13 = sphi %s728_s13, %s1004_s13   ;;  %s677_s12 = sphi %s726_s12, %s1003_s12  }
   0x7   : > { %s31_s20 = sadd.s32 1, %s693_s16  ;;  %s40_s21 = sadd.s32 1, %s685_s14 }
   0x8   : > { %p33_p0 = scmp.ge.s32.totalorder %s31_s20, 2  ;;  %p47_p1 = scmp.ne.s32.totalorder %s685_s14, %s681_s13 }
   0x9   : > { %p48_p2 = scmp.eq.s32.totalorder %s697_s17, 0  ;;  %p53_p3 = scmp.ne.s32.totalorder %s681_s13, %s677_s12 }
   0xa   : > { %s1009_s20 = smov (%p33_p0, %s31_s20), 0  ;;  %p54_p5 = scmp.eq.s32.totalorder %s487_s18, 0 }
   0xb   : > { %p767_p4 = por %p48_p2, %p47_p1  ;;  %s35_s23 = ssub.s32 %s693_s16, %s1009_s20 }
   0xc   : > { %p121_p6 = scmp.eq.s32.totalorder %s487_s18, 1  ;;  %p38_p7 = scmp.eq.s32.totalorder %s35_s23, 0 }
   0xd   : > { %p773_p8 = por %p54_p5, %p53_p3  ;;  %p127_p10 = scmp.eq.s32.totalorder %s488_s19, 1 }
   0xe   : > { %p777_p9 = por %p121_p6, %p47_p1  ;;  %p520_p13 = scmp.lt.s32.totalorder %s697_s17, 2 }
   0xf   : > { %s782_s26 = scalar_select %p38_p7, %s685_s14, %s40_s21  }
  0x10   : > { %s996_s25 = scalar_select %p777_p9, 1, 0 }
  0x11   : > { %p784_p11 = por %p127_p10, %p53_p3  ;;  %s153_s28 = sand.u32 1, %s685_s14  }
  0x12   : > { %s491_s29 = sshll.u32 %s153_s28, 6  ;;  %s505_s30 = sshll.u32 %s693_s16, 10 }
  0x13   : > { %s997_s27 = scalar_select %p784_p11, 1, 0 }
  0x14   : > { %s795_s6 = scalar_lea.hbm %s989_s0, %s505_s30  ;;  %s157_s7 = scalar_lea.vmem [#allocation2], %s491_s29 }
  0x15   : > { %s166_s8 = sshll.u32 %s157_s7, 4  ;;  %p801_p0 = pnand %p520_p13, %p767_p4  ;;  %s797_s8 = int_to_ptr.vmem [resolvable:$true] %s166_s8 }
  0x16   : > { %s806_s10 = scalar_lea.sflag [#allocation3], %s153_s28  ;;  %s585_s11 = scalar_lea.hbm %s795_s6, 1024 }
  0x17   : > { %p586_p2 = scmp.ne.s32.totalorder %s795_s6, %s585_s11  ;;  %p587_p3 = pneg %p801_p0 }
  0x18   : > { %s590_s21 = scalar_lea.hbm %s989_s0, 2048  ;;  %p591_p4 = scmp.lt.u32.totalorder %s795_s6, %s989_s0 }
  0x19   : > { %p588_p5 = pnand %p587_p3, %p586_p2  ;;  %p592_p7 = scmp.lt.u32.totalorder %s590_s21, %s585_s11 }
  0x1a   : > { %p594_p13 = scmp.lt.u32.totalorder %s585_s11, %s795_s6 }
  0x1b   : > { %p589_p6 = pneg %p588_p5  ;;  %p593_p10 = por %p592_p7, %p591_p4 }
  0x1d   : > { %p595_p12 = por %p594_p13, %p593_p10 }
  0x1f   : > { %p596_p1 = pnand %p595_p12, %p589_p6 }
  0x21   : > { %599 = shalt.err (!%p596_p1)
}
  0x22   : > { %s600_s28 = scalar_lea.vmem %s797_s8, 1024  ;;  %s699_s29 = smov [#allocation2]  }
  0x23   : > { %p601_p2 = scmp.ne.s32.totalorder %s797_s8, %s600_s28  ;;  %s605_s30 = sshll.u32 %s699_s29, 4  ;;  %s606_s30 = int_to_ptr.vmem [resolvable:$false] %s605_s30 }
  0x24   : > { %s607_s4 = scalar_lea.vmem %s606_s30, 2048  ;;  %p608_p9 = scmp.lt.s32.totalorder %s797_s8, %s606_s30 }
  0x25   : > { %p603_p5 = pnand %p601_p2, %p587_p3  ;;  %p609_p4 = scmp.lt.s32.totalorder %s607_s4, %s600_s28 }
  0x27   : > { %p604_p11 = pneg %p603_p5  ;;  %p610_p7 = por %p609_p4, %p608_p9 }
  0x29   : > { %p611_p10 = pnand %p610_p7, %p604_p11 }
  0x2b   : > { %614 = shalt.err (!%p611_p10)
}
  0x2c   : > { %s700_s5 = smov 128   ;;  %s701_s7 = smov 8  }
  0x2d   : > { %515 = dma.hbm_to_vmem [thread:$0]  (!%p801_p0), %s795_s6, 1024, %s797_s8, %s806_s10, %s700_s5, %s700_s5, %s701_s7  }
  0x2e   : > { %p174_p12 = scmp.lt.s32.totalorder %s697_s17, 3  ;;  %p999_p1 = scmp.ge.s32.totalorder %s697_s17, 1 }
  0x30   : > { %p175_p3 = pnand %p999_p1, %p174_p12 }
  0x31   : > { %s838_s11 = sand.u32 (!%p175_p3), 1, %s681_s13  }
  0x32   : > { %178 = sbr.rel (%p175_p3) target bundleno = 212 (0xd4), region = 32  ;;  %s496_s18 = sshll.u32 (!%p175_p3), %s838_s11, 6 }
  0x33   : > { %s181_s19 = scalar_lea.sflag (!%p175_p3), [#allocation3], %s838_s11  ;;  %s184_s21 = scalar_lea.vmem (!%p175_p3), [#allocation2], %s496_s18 }
  0x39   : > { %668 = dma.done.wait (%p773_p8), %s181_s19, 1024  }
  0x3a   : > { %670 = vsyncadd (%p773_p8), %s181_s19, 4294966272  ;;  %v702_v0 = vmov 0   ;;  %v324_v1 = vld [vmem:[%s991_s2] sm:$0xff]  ;;  %v325_v3 = vld [vmem:[%s991_s2 + $0x8] sm:$0xff]  ;;  %vm217_vm0 = vcmask 130048   ;;  %s507_s29 = sshll.u32 %s689_s15, 10 }
  0x3b   : > { %576 = vset.pattern.permute.xlu1 %v702_v0  ;;  %575 = vset.pattern.permute.xlu0 %v702_v0  ;;  %v322_v2 = vld [vmem:[%s990_s1] sm:$0xff]  ;;  %v323_v4 = vld [vmem:[%s990_s1 + $0x8] sm:$0xff]  ;;  %v868_v9 = vld [vmem:[%s184_s21 + $0x10] sm:$0xff]  ;;  %s206_s30 = scalar_lea.vmem [#allocation5], %s496_s18  ;;  %s934_s7 = scalar_lea.hbm %s992_s3, %s507_s29 }
  0x3c   : > { %362 = vperm.xlu1 %576, %v324_v1   ;;  %344 = vperm.xlu0 %575, %v322_v2   ;;  %v860_v5 = vld [vmem:[%s184_s21] sm:$0xff]  ;;  %v862_v6 = vld [vmem:[%s184_s21 + $0x8] sm:$0xff]  ;;  %v870_v10 = vld [vmem:[%s184_s21 + $0x18] sm:$0xff]  ;;  %v227_v18 = vsel %vm217_vm0, %v868_v9, 0.0  ;;  %v256_v20 = vmul.f32 %v868_v9, %v868_v9  ;;  %s402_s4 = sshll.u32 %s206_s30, 4  ;;  %s387_s18 = scalar_lea.sflag [#allocation4], %s838_s11  ;;  %s936_s4 = int_to_ptr.vmem [resolvable:$true] %s402_s4 }
  0x3d   : > { %v218_v7 = vsel %vm217_vm0, %v860_v5, 0.0  ;;  %v219_v8 = vsel %vm217_vm0, %v862_v6, 0.0  ;;  %v872_v11 = vld [vmem:[%s184_s21 + $0x20] sm:$0xff]  ;;  %v874_v12 = vld [vmem:[%s184_s21 + $0x28] sm:$0xff]  ;;  %v876_v13 = vld [vmem:[%s184_s21 + $0x30] sm:$0xff]  ;;  %v254_v16 = vmul.f32 %v860_v5, %v860_v5  ;;  %v255_v17 = vmul.f32 %v862_v6, %v862_v6  ;;  %s615_s19 = scalar_lea.vmem %s936_s4, 1024 }
  0x3e   : > { %v878_v14 = vld [vmem:[%s184_s21 + $0x38] sm:$0xff]  ;;  %v220_v15 = vadd.f32 %v219_v8, %v218_v7  ;;  %v228_v19 = vsel %vm217_vm0, %v870_v10, 0.0  ;;  %v257_v21 = vmul.f32 %v870_v10, %v870_v10  ;;  %v236_v22 = vsel %vm217_vm0, %v872_v11, 0.0  ;;  %p616_p8 = scmp.ne.s32.totalorder %s936_s4, %s615_s19  ;;  %p1000_p9 = scmp.ne.s32.totalorder %s996_s25, 0 }
  0x3f   : > { %v237_v23 = vsel %vm217_vm0, %v874_v12, 0.0  ;;  %v258_v24 = vmul.f32 %v872_v11, %v872_v11  ;;  %v259_v25 = vmul.f32 %v874_v12, %v874_v12  ;;  %v245_v26 = vsel %vm217_vm0, %v876_v13, 0.0  ;;  %s703_s21 = smov [#allocation5]  }
  0x40   : > { %367 = vperm.xlu1 %576, %v325_v3   ;;  %349 = vperm.xlu0 %575, %v323_v4   ;;  %v246_v27 = vsel %vm217_vm0, %v878_v14, 0.0  ;;  %v260_v28 = vmul.f32 %v876_v13, %v876_v13  ;;  %v261_v29 = vmul.f32 %v878_v14, %v878_v14  ;;  %v229_v30 = vadd.f32 %v228_v19, %v227_v18  ;;  %p617_p11 = pnand %p616_p8, %p1000_p9  ;;  %s619_s6 = sshll.u32 %s703_s21, 4  ;;  %s620_s6 = int_to_ptr.vmem [resolvable:$false] %s619_s6 }
  0x41   : > { %v262_v31 = vsel %vm217_vm0, %v254_v16, 0.0  ;;  %v263_v32 = vsel %vm217_vm0, %v255_v17, 0.0  ;;  %v238_v33 = vadd.f32 %v237_v23, %v236_v22  ;;  %v271_v34 = vsel %vm217_vm0, %v256_v20, 0.0  ;;  %s621_s8 = scalar_lea.vmem %s620_s6, 2048  ;;  %p622_p6 = scmp.lt.s32.totalorder %s936_s4, %s620_s6 }
  0x42   : > { %v272_v35 = vsel %vm217_vm0, %v257_v21, 0.0  ;;  %v247_v36 = vadd.f32 %v246_v27, %v245_v26  ;;  %v280_v37 = vsel %vm217_vm0, %v258_v24, 0.0  ;;  %v281_v38 = vsel %vm217_vm0, %v259_v25, 0.0  ;;  %p618_p0 = pneg %p617_p11  ;;  %p623_p13 = scmp.lt.s32.totalorder %s621_s8, %s615_s19 }
  0x43   : > { %v221_v39 = vrot.slane %v220_v15, 4  ;;  %v264_v40 = vadd.f32 %v263_v32, %v262_v31  ;;  %v289_v41 = vsel %vm217_vm0, %v260_v28, 0.0  ;;  %v290_v42 = vsel %vm217_vm0, %v261_v29, 0.0 }
  0x44   : > { %v230_v43 = vrot.slane %v229_v30, 4  ;;  %v273_v44 = vadd.f32 %v272_v35, %v271_v34  ;;  %v239_v45 = vrot.slane %v238_v33, 4  ;;  %v282_v46 = vadd.f32 %v281_v38, %v280_v37  ;;  %p624_p2 = por %p623_p13, %p622_p6 }
  0x45   : > { %v248_v47 = vrot.slane %v247_v36, 4  ;;  %v291_v48 = vadd.f32 %v290_v42, %v289_v41  ;;  %v222_v49 = vadd.f32 %v221_v39, %v220_v15  ;;  %v265_v50 = vrot.slane %v264_v40, 4 }
  0x46   : > { %v231_v51 = vadd.f32 %v230_v43, %v229_v30  ;;  %v274_v52 = vrot.slane %v273_v44, 4  ;;  %v240_v53 = vadd.f32 %v239_v45, %v238_v33  ;;  %v283_v54 = vrot.slane %v282_v46, 4  ;;  %p625_p5 = pnand %p624_p2, %p618_p0 }
  0x47   : > { %v249_v55 = vadd.f32 %v248_v47, %v247_v36  ;;  %v292_v56 = vrot.slane %v291_v48, 4  ;;  %v223_v57 = vrot.slane %v222_v49, 2  ;;  %v266_v58 = vadd.f32 %v265_v50, %v264_v40 }
  0x48   : > { %v232_v59 = vrot.slane %v231_v51, 2  ;;  %v275_v60 = vadd.f32 %v274_v52, %v273_v44  ;;  %v241_v61 = vrot.slane %v240_v53, 2  ;;  %v284_v62 = vadd.f32 %v283_v54, %v282_v46 }
  0x49   : > { %v250_v63 = vrot.slane %v249_v55, 2  ;;  %v293_v0 = vadd.f32 %v292_v56, %v291_v48  ;;  %v224_v1 = vadd.f32 %v223_v57, %v222_v49  ;;  %v267_v2 = vrot.slane %v266_v58, 2 }
  0x4a   : > { %v233_v3 = vadd.f32 %v232_v59, %v231_v51  ;;  %v276_v4 = vrot.slane %v275_v60, 2  ;;  %v242_v7 = vadd.f32 %v241_v61, %v240_v53  ;;  %v285_v8 = vrot.slane %v284_v62, 2 }
  0x4b   : > { %v251_v15 = vadd.f32 %v250_v63, %v249_v55  ;;  %v294_v16 = vrot.slane %v293_v0, 2  ;;  %v225_v17 = vrot.slane %v224_v1, 1  ;;  %v268_v18 = vadd.f32 %v267_v2, %v266_v58 }
  0x4c   : > { %v234_v19 = vrot.slane %v233_v3, 1  ;;  %v277_v20 = vadd.f32 %v276_v4, %v275_v60  ;;  %v243_v21 = vrot.slane %v242_v7, 1  ;;  %v286_v22 = vadd.f32 %v285_v8, %v284_v62 }
  0x4d   : > { %v252_v23 = vrot.slane %v251_v15, 1  ;;  %v295_v24 = vadd.f32 %v294_v16, %v293_v0  ;;  %v226_v25 = vadd.f32 %v225_v17, %v224_v1  ;;  %v269_v26 = vrot.slane %v268_v18, 1 }
  0x4e   : > { %v235_v27 = vadd.f32 %v234_v19, %v233_v3  ;;  %v278_v28 = vrot.slane %v277_v20, 1  ;;  %v244_v29 = vadd.f32 %v243_v21, %v242_v7  ;;  %v287_v30 = vrot.slane %v286_v22, 1 }
  0x4f   : > { %v253_v31 = vadd.f32 %v252_v23, %v251_v15  ;;  %v296_v32 = vrot.slane %v295_v24, 1  ;;  %v270_v33 = vadd.f32 %v269_v26, %v268_v18  ;;  %v298_v34 = vmul.f32 0.0625, %v226_v25 }
  0x50   : > { %v279_v35 = vadd.f32 %v278_v28, %v277_v20  ;;  %v299_v36 = vmul.f32 0.0625, %v235_v27  ;;  %v288_v37 = vadd.f32 %v287_v30, %v286_v22  ;;  %v300_v38 = vmul.f32 0.0625, %v244_v29 }
  0x51   : > { %v297_v39 = vadd.f32 %v296_v32, %v295_v24  ;;  %v301_v40 = vmul.f32 0.0625, %v253_v31  ;;  %v302_v41 = vmul.f32 0.0625, %v270_v33  ;;  %v306_v42 = vmul.f32 %v298_v34, %v298_v34 }
  0x52   : > { %v303_v43 = vmul.f32 0.0625, %v279_v35  ;;  %v307_v44 = vmul.f32 %v299_v36, %v299_v36  ;;  %v304_v45 = vmul.f32 0.0625, %v288_v37  ;;  %v308_v46 = vmul.f32 %v300_v38, %v300_v38 }
  0x53   : > { %v305_v47 = vmul.f32 0.0625, %v297_v39  ;;  %v309_v48 = vmul.f32 %v301_v40, %v301_v40  ;;  %v310_v49 = vsub.f32 %v302_v41, %v306_v42  ;;  %v326_v60 = vsub.f32 %v860_v5, %v298_v34 }
  0x54   : > { %v311_v50 = vsub.f32 %v303_v43, %v307_v44  ;;  %v312_v51 = vsub.f32 %v304_v45, %v308_v46  ;;  %v328_v61 = vsub.f32 %v868_v9, %v299_v36  ;;  %v330_v62 = vsub.f32 %v872_v11, %v300_v38 }
  0x55   : > { %v313_v52 = vsub.f32 %v305_v47, %v309_v48  ;;  %v314_v53 = vadd.f32 1e-05, %v310_v49  ;;  %v332_v63 = vsub.f32 %v876_v13, %v301_v40  ;;  %v327_v1 = vsub.f32 %v862_v6, %v298_v34 }
  0x56   : > { %v315_v54 = vadd.f32 1e-05, %v311_v50  ;;  %v316_v55 = vadd.f32 1e-05, %v312_v51  ;;  %v329_v2 = vsub.f32 %v870_v10, %v299_v36  ;;  %v331_v3 = vsub.f32 %v874_v12, %v300_v38 }
  0x57   : > { %v317_v56 = vadd.f32 1e-05, %v313_v52  ;;  %577 = vrsqrt.f32 %v314_v53  ;;  %v333_v4 = vsub.f32 %v878_v14, %v301_v40 }
  0x58   : > { %579 = vrsqrt.f32 %v315_v54 }
  0x59   : > { %581 = vrsqrt.f32 %v316_v55 }
  0x5a   : > { %583 = vrsqrt.f32 %v317_v56 }
  0x61   : > { %v578_v57 = vpop.eup %577 }
  0x62   : > { %v580_v58 = vpop.eup %579  ;;  %v334_v7 = vmul.f32 %v578_v57, %v326_v60  ;;  %v335_v11 = vmul.f32 %v578_v57, %v327_v1 }
  0x63   : > { %v582_v59 = vpop.eup %581  ;;  %v336_v8 = vmul.f32 %v580_v58, %v328_v61  ;;  %v337_v17 = vmul.f32 %v580_v58, %v329_v2 }
  0x64   : > { %v584_v0 = vpop.eup %583  ;;  %v338_v15 = vmul.f32 %v582_v59, %v330_v62  ;;  %v339_v13 = vmul.f32 %v582_v59, %v331_v3 }
  0x65   : > { %v340_v5 = vmul.f32 %v584_v0, %v332_v63  ;;  %v341_v18 = vmul.f32 %v584_v0, %v333_v4 }
  0xbb   : > { %v363_v9 = vpop.permute.xlu1 %362  ;;  %v345_v16 = vpop.permute.xlu0 %344 }
  0xbc   : > { %v352_v19 = vmul.f32 %v345_v16, %v334_v7  ;;  %v354_v6 = vmul.f32 %v345_v16, %v336_v8  ;;  %v356_v20 = vmul.f32 %v345_v16, %v338_v15  ;;  %v358_v10 = vmul.f32 %v345_v16, %v340_v5 }
  0xbe   : > { %v370_v21 = vadd.f32 %v363_v9, %v352_v19  ;;  %v372_v12 = vadd.f32 %v363_v9, %v354_v6  ;;  %v374_v22 = vadd.f32 %v363_v9, %v356_v20  ;;  %v376_v14 = vadd.f32 %v363_v9, %v358_v10 }
  0xbf   : > { %v350_v23 = vpop.permute.xlu0 %349  ;;  %v368_v28 = vpop.permute.xlu1 %367 }
  0xc0   : > { %378 = vst.msk [vmem:[%s206_s30] sm:$0xff] %vm217_vm0, %v370_v21  ;;  %380 = vst.msk [vmem:[%s206_s30 + $0x10] sm:$0xff] %vm217_vm0, %v372_v12  ;;  %v353_v24 = vmul.f32 %v350_v23, %v335_v11  ;;  %v355_v25 = vmul.f32 %v350_v23, %v337_v17  ;;  %v357_v26 = vmul.f32 %v350_v23, %v339_v13 }
  0xc1   : > { %382 = vst.msk [vmem:[%s206_s30 + $0x20] sm:$0xff] %vm217_vm0, %v374_v22  ;;  %384 = vst.msk [vmem:[%s206_s30 + $0x30] sm:$0xff] %vm217_vm0, %v376_v14  ;;  %v359_v27 = vmul.f32 %v350_v23, %v341_v18 }
  0xc2   : > { %v371_v29 = vadd.f32 %v368_v28, %v353_v24  ;;  %v373_v30 = vadd.f32 %v368_v28, %v355_v25  ;;  %v375_v31 = vadd.f32 %v368_v28, %v357_v26 }
  0xc3   : > { %v377_v32 = vadd.f32 %v368_v28, %v359_v27 }
  0xc4   : > { %379 = vst.msk [vmem:[%s206_s30 + $0x8] sm:$0xff] %vm217_vm0, %v371_v29  ;;  %381 = vst.msk [vmem:[%s206_s30 + $0x18] sm:$0xff] %vm217_vm0, %v373_v30 }
  0xc5   : > { %383 = vst.msk [vmem:[%s206_s30 + $0x28] sm:$0xff] %vm217_vm0, %v375_v31  ;;  %385 = vst.msk [vmem:[%s206_s30 + $0x38] sm:$0xff] %vm217_vm0, %v377_v32 }
  0xc6   : > { %628 = shalt.err (!%p625_p5)
}
  0xc7   : > { %s629_s9 = scalar_lea.hbm %s934_s7, 1024  ;;  %s633_s23 = scalar_lea.hbm %s992_s3, 2048 }
  0xc8   : > { %p630_p4 = scmp.ne.s32.totalorder %s934_s7, %s629_s9  ;;  %p634_p12 = scmp.lt.u32.totalorder %s934_s7, %s992_s3 }
  0xc9   : > { %p635_p1 = scmp.lt.u32.totalorder %s633_s23, %s629_s9  ;;  %p637_p8 = scmp.lt.u32.totalorder %s629_s9, %s934_s7 }
  0xca   : > { %p631_p7 = pnand %p630_p4, %p1000_p9 }
  0xcb   : > { %p636_p3 = por %p635_p1, %p634_p12 }
  0xcc   : > { %p632_p10 = pneg %p631_p7 }
  0xcd   : > { %p638_p11 = por %p637_p8, %p636_p3 }
  0xcf   : > { %p639_p0 = pnand %p638_p11, %p632_p10 }
  0xd1   : > { %642 = shalt.err (!%p639_p0)
}
  0xd2   : > { %s704_s29 = smov 128   ;;  %s705_s30 = smov 8  }
  0xd3   : > { %510 = dma.vmem_to_hbm [thread:$0]  (%p1000_p9), %s936_s4, 1024, %s934_s7, %s387_s18, %s704_s29, %s704_s29, %s705_s30  }
  0xd4 PF: > { %s417_s15 = sand.u32 1, %s677_s12   ;;  %p1001_p6 = scmp.ne.s32.totalorder %s997_s27, 0 }
  0xd5   : > { %p1002_p13 = scmp.ge.s32.totalorder %s697_s17, 2  ;;  %s418_s5 = scalar_lea.sflag [#allocation4], %s417_s15 }
  0xd7   : > { %p517_p2 = pnand %p1002_p13, %p1001_p6 }
  0xd9   : > { %672 = dma.done.wait (!%p517_p2), %s418_s5, 1024  }
  0xda   : > { %674 = vsyncadd (!%p517_p2), %s418_s5, 4294966272  ;;  %s19_s17 = sadd.s32 1, %s697_s17   ;;  %s1003_s12 = smov %s681_s13 }
  0xdb   : > { %p16_p5 = scmp.ge.s32.totalorder %s19_s17, 4   ;;  %s1004_s13 = smov %s685_s14 }
  0xdc   : > { %s1005_s14 = smov %s782_s26  ;;  %s1006_s15 = smov %s693_s16 }
  0xdd   : > { %s1007_s16 = smov %s1009_s20  ;;  %18 = sbr.rel (!%p16_p5) target bundleno = 6 (0x6), region = 77 }
  0xe4   :  { %423 = vsyncpa [#allocation3], 1 }
  0xe5   :  { %425 = vsyncpa [#allocation3 + $0x1], 1 }
  0xe6   :  { %426 = vsyncpa [#allocation4], 1 }
  0xe7   :  { %428 = vsyncpa [#allocation4 + $0x1], 1 }

</bundles_post_ra>
